<compile_context>
chip_gen: v5e
topology: v5e:2x2
jax: 0.10.0
libtpu: 0.0.40
codegen_flags: <defaults>
</compile_context>

<pallas_src>
import jax
import jax.numpy as jnp
import numpy as np
from jax import lax
from jax.experimental import pallas as pl
from jax.experimental.pallas import tpu as pltpu

# ---------------- toy config (Qwen2Config / moe_config shapes) ----------------
HIDDEN = 32            # config.hidden_size
MOE_INTER = 64         # config.moe_config.moe_intermediate_size
SHARED_INTER = 64      # config.moe_config.shared_expert_intermediate_size
NUM_EXPERTS = 4        # config.moe_config.num_experts
TOP_K = 2              # config.moe_config.top_k
EXPERT_PARALLEL = 1    # parallel_config.expert_parallel_size (local == global)
TOKENS = 16            # batch * seq tokens (already flattened)
TOKEN_BLOCK = 8        # row tile; use 128 (v5e) / 256 (v6e, v7x) at real sizes


def _round_up(v, m):
    return (v + m - 1) // m * m


# ----------------------------- Pallas kernels ---------------------------------
def grouped_mlp_kernel(block_expert_ref, x_ref, w_ref, gu_ref, dn_ref, out_ref):
    """One (TOKEN_BLOCK, H) tile of permuted tokens through its own expert.

    gu_ref / dn_ref are the weights of the expert owning this row block,
    selected by the scalar-prefetched `block_expert` array inside the
    index_maps (true grouped GEMM: no token touches a foreign expert).
    """
    del block_expert_ref  # consumed only by the index_maps
    x = x_ref[...]                                                    # (TM, H) bf16
    merged = jnp.dot(x, gu_ref[...], preferred_element_type=jnp.float32)  # (TM, 2I)
    half = merged.shape[-1] // 2
    gate, up = merged[:, :half], merged[:, half:]   # lane-aligned when I % 128 == 0
    h = (gate * jax.nn.sigmoid(gate)) * up          # SiLU(gate) * up
    y = jnp.dot(h.astype(x.dtype), dn_ref[...], preferred_element_type=jnp.float32)
    out_ref[...] = w_ref[...] * y                   # combine weight (0 on pad rows)


def shared_expert_kernel(x_ref, routed_ref, sgu_ref, sdn_ref, sgw_ref, out_ref):
    """Shared Qwen2MLP + sigmoid gate, fused with the final combine."""
    x = x_ref[...]                                                    # (TM, H) bf16
    merged = jnp.dot(x, sgu_ref[...], preferred_element_type=jnp.float32)  # (TM, 2Is)
    half = merged.shape[-1] // 2
    gate, up = merged[:, :half], merged[:, half:]
    h = (gate * jax.nn.sigmoid(gate)) * up
    shared = jnp.dot(h.astype(x.dtype), sdn_ref[...],
                     preferred_element_type=jnp.float32)              # (TM, H)
    # shared_expert_gate: Linear(H, 1) as VPU mul + row reduce (avoids N=1 MXU matmul)
    gate_logit = jnp.sum(x.astype(jnp.float32) * sgw_ref[...],
                         axis=-1, keepdims=True)                      # (TM, 1)
    sg = jax.nn.sigmoid(gate_logit)
    out_ref[...] = (routed_ref[...] + sg * shared).astype(out_ref.dtype)


# ----------------------------- pallas_call wrappers ----------------------------
def grouped_moe_mlp(block_expert, x_perm, w_perm, gate_up, down, *, tm=TOKEN_BLOCK):
    R, H = x_perm.shape
    E, _, two_i = gate_up.shape
    inter = two_i // 2
    num_blocks = R // tm
    cost = pl.CostEstimate(
        flops=6 * R * H * inter,
        transcendentals=R * inter,
        bytes_accessed=(x_perm.size * 2 + w_perm.size * 4 + gate_up.size * 2
                        + down.size * 2 + R * H * 4),
    )
    return pl.pallas_call(
        grouped_mlp_kernel,
        out_shape=jax.ShapeDtypeStruct((R, H), jnp.float32),
        grid_spec=pltpu.PrefetchScalarGridSpec(
            num_scalar_prefetch=1,               # block_expert -> SMEM
            grid=(num_blocks,),
            in_specs=[
                pl.BlockSpec((tm, H), lambda b, be: (b, 0)),      # permuted tokens
                pl.BlockSpec((tm, 1), lambda b, be: (b, 0)),      # combine weights
                pl.BlockSpec((pl.Squeezed(), H, two_i),
                             lambda b, be: (be[b], 0, 0)),        # gate_up[expert]
                pl.BlockSpec((pl.Squeezed(), inter, H),
                             lambda b, be: (be[b], 0, 0)),        # down[expert]
            ],
            out_specs=pl.BlockSpec((tm, H), lambda b, be: (b, 0)),
        ),
        compiler_params=pltpu.CompilerParams(dimension_semantics=("parallel",)),
        cost_estimate=cost,
    )(block_expert, x_perm, w_perm, gate_up, down)


def shared_expert_combine(x, routed, s_gate_up, s_down, s_gate_w, *, tm=TOKEN_BLOCK):
    T, H = x.shape
    two_is = s_gate_up.shape[1]
    inter_s = two_is // 2
    cost = pl.CostEstimate(
        flops=6 * T * H * inter_s + 2 * T * H,
        transcendentals=T * (inter_s + 1),
        bytes_accessed=(x.size * 2 + routed.size * 4 + s_gate_up.size * 2
                        + s_down.size * 2 + s_gate_w.size * 4 + T * H * 2),
    )
    return pl.pallas_call(
        shared_expert_kernel,
        out_shape=jax.ShapeDtypeStruct((T, H), x.dtype),
        grid_spec=pltpu.PrefetchScalarGridSpec(
            num_scalar_prefetch=0,
            grid=(T // tm,),
            in_specs=[
                pl.BlockSpec((tm, H), lambda i: (i, 0)),          # x
                pl.BlockSpec((tm, H), lambda i: (i, 0)),          # routed (f32)
                pl.BlockSpec((H, two_is), lambda i: (0, 0)),      # shared gate_up
                pl.BlockSpec((inter_s, H), lambda i: (0, 0)),     # shared down
                pl.BlockSpec((1, H), lambda i: (0, 0)),           # shared_expert_gate
            ],
            out_specs=pl.BlockSpec((tm, H), lambda i: (i, 0)),
        ),
        compiler_params=pltpu.CompilerParams(dimension_semantics=("parallel",)),
        cost_estimate=cost,
    )(x, routed, s_gate_up, s_down, s_gate_w)


# ----------------------------- full layer (glue + kernels) ---------------------
def qwen2_moe_layer(x, params, *, tm=TOKEN_BLOCK):
    """Qwen2MoELayer._core_forward."""
    T, H = x.shape
    E, K = NUM_EXPERTS, TOP_K

    # ---- Router (fp32, plain XLA: tiny, lane-sparse matmul) ----
    logits = jnp.dot(x.astype(jnp.float32), params["router_w"].T)       # (T, E)
    probs = jax.nn.softmax(logits, axis=-1)
    routing_weights, routing_idx = lax.top_k(probs, K)                  # (T, K)
    routing_idx = routing_idx.astype(jnp.int32)

    # ---- ops.permute equivalent: sort (token, k) copies by expert; pad each
    # expert group to a multiple of the row tile so a block never spans experts.
    flat_expert = routing_idx.reshape(-1)                               # (T*K,)
    flat_token = jnp.repeat(jnp.arange(T, dtype=jnp.int32), K)
    flat_weight = routing_weights.reshape(-1)
    order = jnp.argsort(flat_expert)
    sorted_expert = flat_expert[order]
    sorted_token = flat_token[order]
    sorted_weight = flat_weight[order]

    counts = jnp.bincount(flat_expert, length=E).astype(jnp.int32)      # (E,)
    padded_counts = ((counts + tm - 1) // tm) * tm
    group_starts = jnp.concatenate(
        [jnp.zeros((1,), jnp.int32), jnp.cumsum(counts)[:-1].astype(jnp.int32)])
    padded_starts = jnp.concatenate(
        [jnp.zeros((1,), jnp.int32), jnp.cumsum(padded_counts)[:-1].astype(jnp.int32)])
    rank = jnp.arange(T * K, dtype=jnp.int32) - group_starts[sorted_expert]
    padded_pos = padded_starts[sorted_expert] + rank                    # (T*K,)

    r_max = _round_up(T * K + E * (tm - 1), tm)                         # static
    src_token = jnp.zeros((r_max,), jnp.int32).at[padded_pos].set(sorted_token)
    row_weight = jnp.zeros((r_max,), jnp.float32).at[padded_pos].set(sorted_weight)

    padded_ends = jnp.cumsum(padded_counts).astype(jnp.int32)
    block_start = jnp.arange(r_max // tm, dtype=jnp.int32) * tm
    block_expert = jnp.minimum(
        jnp.searchsorted(padded_ends, block_start, side="right"), E - 1
    ).astype(jnp.int32)                                                 # (r_max//tm,)

    x_perm = x[src_token]                       # (r_max, H) gather == permute
    w_perm = row_weight[:, None]                # (r_max, 1) per-row combine weight

    out_perm = grouped_moe_mlp(block_expert, x_perm, w_perm,
                               params["gate_up"], params["down"], tm=tm)

    # ---- ops.unpermute equivalent: gather each (token, k) row back, sum over k
    # (combine weights were already applied inside the kernel).
    exp_to_pad = jnp.zeros((T * K,), jnp.int32).at[order].set(padded_pos)
    routed = out_perm[exp_to_pad].reshape(T, K, H).sum(axis=1)          # (T, H) f32

    # ---- shared expert + sigmoid gate + final combine (separate pallas_call) ----
    out = shared_expert_combine(x, routed, params["s_gate_up"],
                                params["s_down"], params["s_gate_w"], tm=tm)
    return {"hidden_states": out}


# ----------------------------- reference (plain JAX, dense-masked) -------------
def reference(x, params):
    logits = jnp.dot(x.astype(jnp.float32), params["router_w"].T)
    probs = jax.nn.softmax(logits, axis=-1)
    vals, idx = lax.top_k(probs, TOP_K)
    cw = jnp.einsum("tk,tke->te", vals,
                    jax.nn.one_hot(idx, NUM_EXPERTS, dtype=jnp.float32))
    out = jnp.zeros((x.shape[0], HIDDEN), jnp.float32)
    for e in range(NUM_EXPERTS):
        merged = jnp.dot(x, params["gate_up"][e], preferred_element_type=jnp.float32)
        g, u = merged[:, :MOE_INTER], merged[:, MOE_INTER:]
        h = (g * jax.nn.sigmoid(g)) * u
        y = jnp.dot(h.astype(x.dtype), params["down"][e],
                    preferred_element_type=jnp.float32)
        out = out + cw[:, e:e + 1] * y
    m2 = jnp.dot(x, params["s_gate_up"], preferred_element_type=jnp.float32)
    g2, u2 = m2[:, :SHARED_INTER], m2[:, SHARED_INTER:]
    shared = jnp.dot(((g2 * jax.nn.sigmoid(g2)) * u2).astype(x.dtype),
                     params["s_down"], preferred_element_type=jnp.float32)
    sg = jax.nn.sigmoid(jnp.dot(x.astype(jnp.float32), params["s_gate_w"].T))
    return (out + sg * shared).astype(x.dtype)


# ----------------------------- main --------------------------------------------
if __name__ == "__main__":
    key = jax.random.PRNGKey(0)
    ks = jax.random.split(key, 7)
    num_local_experts = NUM_EXPERTS // EXPERT_PARALLEL

    params = {
        # Router.weight: (num_experts, hidden) fp32
        "router_w": jax.random.normal(ks[0], (NUM_EXPERTS, HIDDEN), jnp.float32),
        # GroupedMLP.merged_gate_up_proj: (E, H, 2*I)
        "gate_up": (0.1 * jax.random.normal(
            ks[1], (num_local_experts, HIDDEN, 2 * MOE_INTER))).astype(jnp.bfloat16),
        # GroupedMLP.merged_down_proj: (E, I, H)
        "down": (0.1 * jax.random.normal(
            ks[2], (num_local_experts, MOE_INTER, HIDDEN))).astype(jnp.bfloat16),
        # shared expert Qwen2MLP (merged gate_up + down)
        "s_gate_up": (0.1 * jax.random.normal(
            ks[3], (HIDDEN, 2 * SHARED_INTER))).astype(jnp.bfloat16),
        "s_down": (0.1 * jax.random.normal(
            ks[4], (SHARED_INTER, HIDDEN))).astype(jnp.bfloat16),
        # shared_expert_gate: nn.Linear(H, 1, bias=False) weight, stored (1, H)
        "s_gate_w": (0.1 * jax.random.normal(
            ks[5], (1, HIDDEN))).astype(jnp.float32),
    }

    x = (0.5 * jax.random.normal(ks[6], (TOKENS, HIDDEN))).astype(jnp.bfloat16)

    layer = jax.jit(qwen2_moe_layer)
    out = layer(x, params)["hidden_states"]
    out = jax.block_until_ready(out)

    ref = jax.block_until_ready(reference(x, params))
    np.testing.assert_allclose(np.asarray(out, np.float32),
                               np.asarray(ref, np.float32),
                               rtol=5e-2, atol=5e-2)

    print("KERNEL_OK")
</pallas_src>

<mosaic_0001>
module attributes {stable_mosaic.version = 11 : i64} {
  func.func @grouped_mlp_kernel(%arg0: i32, %arg1: memref<8xi32, #tpu.memory_space<smem>>, %arg2: memref<8x32xbf16, #tpu.memory_space<vmem>>, %arg3: memref<8x1xf32, #tpu.memory_space<vmem>>, %arg4: memref<1x32x128xbf16, #tpu.memory_space<vmem>>, %arg5: memref<1x64x32xbf16, #tpu.memory_space<vmem>>, %arg6: memref<8x32xf32, #tpu.memory_space<vmem>>) attributes {dimension_semantics = [#tpu.dimension_semantics<parallel>], iteration_bounds = array<i64: 8>, scalar_prefetch = 1 : i64, scratch_operands = 0 : i64, tpu.core_type = #tpu.core_type<tc>, window_params = [{transform_indices = @transform_0, window_bounds = array<i64: 8, 32>}, {transform_indices = @transform_1, window_bounds = array<i64: 8, 1>}, {transform_indices = @transform_2, window_bounds = array<i64: 1, 32, 128>}, {transform_indices = @transform_3, window_bounds = array<i64: 1, 64, 32>}, {transform_indices = @transform_4, window_bounds = array<i64: 8, 32>}]} {
    %c0 = arith.constant 0 : index
    %c0_0 = arith.constant 0 : index
    %0 = vector.load %arg2[%c0, %c0_0] : memref<8x32xbf16, #tpu.memory_space<vmem>>, vector<8x32xbf16>
    %c0_1 = arith.constant 0 : index
    %c0_2 = arith.constant 0 : index
    %c0_3 = arith.constant 0 : index
    %1 = vector.load %arg4[%c0_1, %c0_2, %c0_3] : memref<1x32x128xbf16, #tpu.memory_space<vmem>>, vector<1x32x128xbf16>
    %2 = vector.shape_cast %1 : vector<1x32x128xbf16> to vector<32x128xbf16>
    %cst = arith.constant dense<0.000000e+00> : vector<8x128xf32>
    %3 = tpu.matmul %0, %2, %cst {dimension_numbers = #tpu.dot_dimension_numbers<[1], [0], [0], [1], [0, 0, 1, 1], [], []>} : vector<8x32xbf16>, vector<32x128xbf16>, vector<8x128xf32> -> vector<8x128xf32>
    %4 = vector.extract_strided_slice %3 {offsets = [0, 0], sizes = [8, 64], strides = [1, 1]} : vector<8x128xf32> to vector<8x64xf32>
    %5 = vector.extract_strided_slice %3 {offsets = [0, 64], sizes = [8, 64], strides = [1, 1]} : vector<8x128xf32> to vector<8x64xf32>
    %6 = arith.negf %4 : vector<8x64xf32>
    %7 = math.exp %6 : vector<8x64xf32>
    %cst_4 = arith.constant 1.000000e+00 : f32
    %8 = vector.broadcast %cst_4 : f32 to vector<8x64xf32>
    %9 = arith.addf %8, %7 : vector<8x64xf32>
    %10 = arith.divf %8, %9 : vector<8x64xf32>
    %11 = arith.mulf %4, %10 : vector<8x64xf32>
    %12 = arith.mulf %11, %5 : vector<8x64xf32>
    %13 = arith.truncf %12 : vector<8x64xf32> to vector<8x64xbf16>
    %c0_5 = arith.constant 0 : index
    %c0_6 = arith.constant 0 : index
    %c0_7 = arith.constant 0 : index
    %14 = vector.load %arg5[%c0_5, %c0_6, %c0_7] : memref<1x64x32xbf16, #tpu.memory_space<vmem>>, vector<1x64x32xbf16>
    %15 = vector.shape_cast %14 : vector<1x64x32xbf16> to vector<64x32xbf16>
    %cst_8 = arith.constant dense<0.000000e+00> : vector<8x32xf32>
    %16 = tpu.matmul %13, %15, %cst_8 {dimension_numbers = #tpu.dot_dimension_numbers<[1], [0], [0], [1], [0, 0, 1, 1], [], []>} : vector<8x64xbf16>, vector<64x32xbf16>, vector<8x32xf32> -> vector<8x32xf32>
    %c0_9 = arith.constant 0 : index
    %c0_10 = arith.constant 0 : index
    %17 = vector.load %arg3[%c0_9, %c0_10] : memref<8x1xf32, #tpu.memory_space<vmem>>, vector<8x1xf32>
    %18 = vector.broadcast %17 : vector<8x1xf32> to vector<8x32xf32>
    %19 = arith.mulf %18, %16 : vector<8x32xf32>
    %c0_11 = arith.constant 0 : index
    %c0_12 = arith.constant 0 : index
    %20 = vector.load %arg6[%c0_11, %c0_12] : memref<8x32xf32, #tpu.memory_space<vmem>>, vector<8x32xf32>
    tpu.vector_store %arg6[%c0_11, %c0_12], %19 {strides = array<i32>} : memref<8x32xf32, #tpu.memory_space<vmem>>, vector<8x32xf32>,
    return
  }
  func.func @transform_0(%arg0: i32, %arg1: memref<8xi32, #tpu.memory_space<smem>>) -> (i32, i32) {
    %c0_i32 = arith.constant 0 : i32
    %c0_i32_0 = arith.constant 0 : i32
    return %arg0, %c0_i32 : i32, i32
  }
  func.func @transform_1(%arg0: i32, %arg1: memref<8xi32, #tpu.memory_space<smem>>) -> (i32, i32) {
    %c0_i32 = arith.constant 0 : i32
    %c0_i32_0 = arith.constant 0 : i32
    return %arg0, %c0_i32 : i32, i32
  }
  func.func @transform_2(%arg0: i32, %arg1: memref<8xi32, #tpu.memory_space<smem>>) -> (i32, i32, i32) {
    %0 = arith.index_cast %arg0 : i32 to index
    %1 = memref.load %arg1[%0] : memref<8xi32, #tpu.memory_space<smem>>
    %c0_i32 = arith.constant 0 : i32
    %c0_i32_0 = arith.constant 0 : i32
    %c0_i32_1 = arith.constant 0 : i32
    return %1, %c0_i32, %c0_i32_0 : i32, i32, i32
  }
  func.func @transform_3(%arg0: i32, %arg1: memref<8xi32, #tpu.memory_space<smem>>) -> (i32, i32, i32) {
    %0 = arith.index_cast %arg0 : i32 to index
    %1 = memref.load %arg1[%0] : memref<8xi32, #tpu.memory_space<smem>>
    %c0_i32 = arith.constant 0 : i32
    %c0_i32_0 = arith.constant 0 : i32
    %c0_i32_1 = arith.constant 0 : i32
    return %1, %c0_i32, %c0_i32_0 : i32, i32, i32
  }
  func.func @transform_4(%arg0: i32, %arg1: memref<8xi32, #tpu.memory_space<smem>>) -> (i32, i32) {
    %c0_i32 = arith.constant 0 : i32
    %c0_i32_0 = arith.constant 0 : i32
    return %arg0, %c0_i32 : i32, i32
  }
}

module attributes {stable_mosaic.version = 11 : i64} {
  func.func @shared_expert_kernel(%arg0: i32, %arg1: memref<8x32xbf16, #tpu.memory_space<vmem>>, %arg2: memref<8x32xf32, #tpu.memory_space<vmem>>, %arg3: memref<32x128xbf16, #tpu.memory_space<vmem>>, %arg4: memref<64x32xbf16, #tpu.memory_space<vmem>>, %arg5: memref<1x32xf32, #tpu.memory_space<vmem>>, %arg6: memref<8x32xbf16, #tpu.memory_space<vmem>>) attributes {dimension_semantics = [#tpu.dimension_semantics<parallel>], iteration_bounds = array<i64: 2>, scalar_prefetch = 0 : i64, scratch_operands = 0 : i64, tpu.core_type = #tpu.core_type<tc>, window_params = [{transform_indices = @transform_0, window_bounds = array<i64: 8, 32>}, {transform_indices = @transform_1, window_bounds = array<i64: 8, 32>}, {pipeline_mode = #tpu.pipeline_mode<synchronous>, transform_indices = @transform_2, window_bounds = array<i64: 32, 128>}, {pipeline_mode = #tpu.pipeline_mode<synchronous>, transform_indices = @transform_3, window_bounds = array<i64: 64, 32>}, {pipeline_mode = #tpu.pipeline_mode<synchronous>, transform_indices = @transform_4, window_bounds = array<i64: 1, 32>}, {transform_indices = @transform_5, window_bounds = array<i64: 8, 32>}]} {
    %c0 = arith.constant 0 : index
    %c0_0 = arith.constant 0 : index
    %0 = vector.load %arg1[%c0, %c0_0] : memref<8x32xbf16, #tpu.memory_space<vmem>>, vector<8x32xbf16>
    %c0_1 = arith.constant 0 : index
    %c0_2 = arith.constant 0 : index
    %1 = vector.load %arg3[%c0_1, %c0_2] : memref<32x128xbf16, #tpu.memory_space<vmem>>, vector<32x128xbf16>
    %cst = arith.constant dense<0.000000e+00> : vector<8x128xf32>
    %2 = tpu.matmul %0, %1, %cst {dimension_numbers = #tpu.dot_dimension_numbers<[1], [0], [0], [1], [0, 0, 1, 1], [], []>} : vector<8x32xbf16>, vector<32x128xbf16>, vector<8x128xf32> -> vector<8x128xf32>
    %3 = vector.extract_strided_slice %2 {offsets = [0, 0], sizes = [8, 64], strides = [1, 1]} : vector<8x128xf32> to vector<8x64xf32>
    %4 = vector.extract_strided_slice %2 {offsets = [0, 64], sizes = [8, 64], strides = [1, 1]} : vector<8x128xf32> to vector<8x64xf32>
    %5 = arith.negf %3 : vector<8x64xf32>
    %6 = math.exp %5 : vector<8x64xf32>
    %cst_3 = arith.constant 1.000000e+00 : f32
    %7 = vector.broadcast %cst_3 : f32 to vector<8x64xf32>
    %8 = arith.addf %7, %6 : vector<8x64xf32>
    %9 = arith.divf %7, %8 : vector<8x64xf32>
    %10 = arith.mulf %3, %9 : vector<8x64xf32>
    %11 = arith.mulf %10, %4 : vector<8x64xf32>
    %12 = arith.truncf %11 : vector<8x64xf32> to vector<8x64xbf16>
    %c0_4 = arith.constant 0 : index
    %c0_5 = arith.constant 0 : index
    %13 = vector.load %arg4[%c0_4, %c0_5] : memref<64x32xbf16, #tpu.memory_space<vmem>>, vector<64x32xbf16>
    %cst_6 = arith.constant dense<0.000000e+00> : vector<8x32xf32>
    %14 = tpu.matmul %12, %13, %cst_6 {dimension_numbers = #tpu.dot_dimension_numbers<[1], [0], [0], [1], [0, 0, 1, 1], [], []>} : vector<8x64xbf16>, vector<64x32xbf16>, vector<8x32xf32> -> vector<8x32xf32>
    %15 = arith.extf %0 : vector<8x32xbf16> to vector<8x32xf32>
    %c0_7 = arith.constant 0 : index
    %c0_8 = arith.constant 0 : index
    %16 = vector.load %arg5[%c0_7, %c0_8] : memref<1x32xf32, #tpu.memory_space<vmem>>, vector<1x32xf32>
    %17 = vector.broadcast %16 : vector<1x32xf32> to vector<8x32xf32>
    %18 = arith.mulf %15, %17 : vector<8x32xf32>
    %cst_9 = arith.constant dense<0.000000e+00> : vector<8xf32>
    %19 = vector.multi_reduction <add>, %18, %cst_9 [1] : vector<8x32xf32> to vector<8xf32>
    %20 = vector.shape_cast %19 : vector<8xf32> to vector<8x1xf32>
    %21 = arith.negf %20 : vector<8x1xf32>
    %22 = math.exp %21 : vector<8x1xf32>
    %cst_10 = arith.constant 1.000000e+00 : f32
    %23 = vector.broadcast %cst_10 : f32 to vector<8x1xf32>
    %24 = arith.addf %23, %22 : vector<8x1xf32>
    %25 = arith.divf %23, %24 : vector<8x1xf32>
    %c0_11 = arith.constant 0 : index
    %c0_12 = arith.constant 0 : index
    %26 = vector.load %arg2[%c0_11, %c0_12] : memref<8x32xf32, #tpu.memory_space<vmem>>, vector<8x32xf32>
    %27 = vector.broadcast %25 : vector<8x1xf32> to vector<8x32xf32>
    %28 = arith.mulf %27, %14 : vector<8x32xf32>
    %29 = arith.addf %26, %28 : vector<8x32xf32>
    %30 = arith.truncf %29 : vector<8x32xf32> to vector<8x32xbf16>
    %c0_13 = arith.constant 0 : index
    %c0_14 = arith.constant 0 : index
    %31 = vector.load %arg6[%c0_13, %c0_14] : memref<8x32xbf16, #tpu.memory_space<vmem>>, vector<8x32xbf16>
    tpu.vector_store %arg6[%c0_13, %c0_14], %30 {strides = array<i32>} : memref<8x32xbf16, #tpu.memory_space<vmem>>, vector<8x32xbf16>,
    return
  }
  func.func @transform_0(%arg0: i32) -> (i32, i32) {
    %c0_i32 = arith.constant 0 : i32
    %c0_i32_0 = arith.constant 0 : i32
    return %arg0, %c0_i32 : i32, i32
  }
  func.func @transform_1(%arg0: i32) -> (i32, i32) {
    %c0_i32 = arith.constant 0 : i32
    %c0_i32_0 = arith.constant 0 : i32
    return %arg0, %c0_i32 : i32, i32
  }
  func.func @transform_2(%arg0: i32) -> (i32, i32) {
    %c0_i32 = arith.constant 0 : i32
    %c0_i32_0 = arith.constant 0 : i32
    %c0_i32_1 = arith.constant 0 : i32
    return %c0_i32, %c0_i32_0 : i32, i32
  }
  func.func @transform_3(%arg0: i32) -> (i32, i32) {
    %c0_i32 = arith.constant 0 : i32
    %c0_i32_0 = arith.constant 0 : i32
    %c0_i32_1 = arith.constant 0 : i32
    return %c0_i32, %c0_i32_0 : i32, i32
  }
  func.func @transform_4(%arg0: i32) -> (i32, i32) {
    %c0_i32 = arith.constant 0 : i32
    %c0_i32_0 = arith.constant 0 : i32
    %c0_i32_1 = arith.constant 0 : i32
    return %c0_i32, %c0_i32_0 : i32, i32
  }
  func.func @transform_5(%arg0: i32) -> (i32, i32) {
    %c0_i32 = arith.constant 0 : i32
    %c0_i32_0 = arith.constant 0 : i32
    return %arg0, %c0_i32 : i32, i32
  }
}

</mosaic_0001>

<bundles_post_ra>
// kernel: custom-call
= control target key start
LH: loop header
LB: loop body
LE: loop exit
PB: predicated region body
PF: predicated region fallthrough
CT: control target
= control target key end

     0   :  { %s6_s0 = inlined_call_operand.vmem [shape: u32[8], index: 0, kind: output, shape index: {}]  }

// kernel: qwen2_moe_layer.2
= control target key start
LH: loop header
LB: loop body
LE: loop exit
PB: predicated region body
PF: predicated region fallthrough
CT: control target
= control target key end

     0   :  { %s567_s21 = smov [#allocation3]   ;;  %s639_s0 = inlined_call_operand.vmem [shape: s32[8], index: 0, kind: input, shape index: {}]   ;;  %s640_s1 = inlined_call_operand.vmem [shape: bf16[64,32], index: 1, kind: input, shape index: {}]   ;;  %s641_s2 = inlined_call_operand.vmem [shape: f32[64,1], index: 2, kind: input, shape index: {}]   ;;  %s642_s3 = inlined_call_operand.vmem [shape: bf16[4,32,128], index: 3, kind: input, shape index: {}]   ;;  %s643_s4 = inlined_call_operand.vmem [shape: bf16[4,64,32], index: 4, kind: input, shape index: {}]   ;;  %s644_s5 = inlined_call_operand.vmem [shape: f32[64,32], index: 5, kind: output, shape index: {}]  }
   0x1   :  { %s11_s20 = sshll.u32 %s639_s0, 4  ;;  %s12_s20 = int_to_ptr.vmem [resolvable:$true] %s11_s20 }
   0x2   :  { %14 = dma.vmem_to_smem %s12_s20, 16, %s567_s21, [#allocation2] }
   0x3   :  { %561 = dma.done.wait [#allocation2], 16 }
   0x4   :  { %562 = vsyncadd [#allocation2], 4294967280 }
   0x5   :  { %17 = sfence }
   0x6   :  { %s603_s22 = smov 0  }
   0x7 LB: > { %s480_s23 = sadd.s32 4294967295, %s565_s22   ;;  %p484_p0 = scmp.ge.s32.totalorder %s565_s22, 1  ;;  %s565_s22 = sphi %s603_s22, %s23_s22  }
   0x8   : > { %p207_p1 = scmp.lt.s32.totalorder %s565_s22, 9 }
   0xa   : > { %p208_p2 = pnand %p484_p0, %p207_p1 }
   0xb   : > { %s255_s0 = sld [smem:[#allocation3 + %s480_s23]] (!%p208_p2)  ;;  %p247_p3 = scmp.lt.s32.totalorder (!%p208_p2), %s480_s23, 7 }
   0xc   : > { %211 = sbr.rel (%p208_p2) target bundleno = 409 (0x199), region = 36  ;;  %s262_s8 = sld [smem:[#allocation3 + %s480_s23]] (!%p208_p2) }
   0xd   : > { %s568_s13 = smov (!%p208_p2), 64  }
  0x11   : > { %p256_p4 = scmp.lt.s32.totalorder %s255_s0, 3  ;;  %vm291_vm0 = vcmask 261120   ;;  %v569_v14 = vmov 0   ;;  %vm366_vm5 = vcmask 523264  }
  0x12   : > { %s611_s24 = scalar_select %p247_p3, %s480_s23, 7  ;;  %540 = vset.pattern.permute.xlu0 %v569_v14 }
  0x13   : > { %s646_s0 = smov (!%p256_p4, %s255_s0), 3  ;;  %p263_p5 = scmp.lt.s32.totalorder %s262_s8, 3 }
  0x14   : > { %s521_s25 = sshll.u32 %s646_s0, 4  ;;  %s485_s29 = sshll.u32 %s611_s24, 2 }
  0x15   : > { %s260_s28 = scalar_lea.vmem %s642_s3, %s521_s25  ;;  %s250_s7 = scalar_lea.vmem %s640_s1, %s485_s29 }
  0x16   : > { %v524_v0 = vld [vmem:[%s260_s28 + $0x8] sm:$0xff]  ;;  %v523_v1 = vld [vmem:[%s260_s28] sm:$0xff]  ;;  %s648_s8 = smov (!%p263_p5, %s262_s8), 3  ;;  %s486_s14 = sshll.u32 %s611_s24, 3 }
  0x17   : > { %301 = vmatpush.bf16.msra.mxu0 %v524_v0  ;;  %v274_v2 = vld [vmem:[%s250_s7] sm:$0xf]  ;;  %s522_s9 = sshll.u32 %s648_s8, 5  ;;  %s254_s17 = scalar_lea.vmem %s641_s2, %s486_s14 }
  0x18   : > { %s267_s12 = scalar_lea.vmem %s643_s4, %s522_s9  ;;  %v383_v12 = vld [vmem:[%s254_s17] sm:$0xff]  ;;  %s272_s20 = scalar_lea.vmem %s644_s5, %s486_s14 }
  0x19   : > { %v528_v3 = vld [vmem:[%s267_s12 + $0x18] sm:$0xff]  ;;  %v527_v4 = vld [vmem:[%s267_s12 + $0x10] sm:$0xff]  ;;  %v526_v5 = vld [vmem:[%s267_s12 + $0x8] sm:$0xff] }
  0x1a   : > { %374 = vmatpush.bf16.msra.mxu1 %v528_v3  ;;  %v525_v11 = vld [vmem:[%s267_s12] sm:$0xff] }
  0x1b   : > { %302 = vmatpush.bf16.msra.mxu0 %v523_v1 }
  0x1e   : > { %500 = vmatmul.msk.bf16.vlgmr.msra.gmra.mxu0 %vm291_vm0, %v274_v2  ;;  %375 = vmatpush.bf16.msra.mxu1 %v527_v4 }
  0x22   : > { %376 = vmatpush.bf16.msra.mxu1 %v526_v5 }
  0x26   : > { %377 = vmatpush.bf16.msra.mxu1 %v525_v11 }
  0x9b   : > { %v304_v6 = vpop.f32.mrf.mxu0 }
  0x9c   : > { %329 = vrot.lane.b32.xlu0 %v304_v6, %s568_s13  ;;  %v501_v8 = vmul.f32 -1.442695, %v304_v6 }
  0x9e   : > { %541 = vpow2.f32 %v501_v8 }
  0xa3   : > { %v306_v7 = vpop.f32.mrf.mxu0 }
  0xa4   : > { %v542_v9 = vpop.eup %541  ;;  %386 = vperm.xlu0 %540, %v383_v12  }
  0xa5   : > { %v311_v10 = vadd.f32 1.0, %v542_v9 }
  0xa7   : > { %543 = vrcp.f32 %v311_v10  ;;  %v323_v19 = vand.u32 2147483648, %v311_v10  ;;  %vm317_vm2 = vweird.f32 %v311_v10  ;;  %v321_v20 = vand.u32 2147483647, %v311_v10 }
  0xa9   : > { %v324_v22 = vor.u32 1.1754944e-38, %v323_v19  ;;  %vm322_vm4 = vcmp.eq.f32.partialorder %v321_v20, 8.507059e+37 }
  0xad   : > { %v544_v13 = vpop.eup %543 }
  0xae   : > { %v313_v15 = vmul.f32 %v544_v13, %v311_v10  ;;  %vm318_vm1 = vweird.f32 %v544_v13 }
  0xaf   : > { %vm319_vm3 = vmor %vm317_vm2, %vm318_vm1 }
  0xb0   : > { %v314_v16 = vsub.f32 1.0, %v313_v15 }
  0xb2   : > { %v315_v17 = vmul.f32 %v544_v13, %v314_v16 }
  0xb4   : > { %v316_v18 = vadd.f32 %v544_v13, %v315_v17 }
  0xb6   : > { %v320_v21 = vsel %vm319_vm3, %v544_v13, %v316_v18 }
  0xb7   : > { %v325_v23 = vsel %vm322_vm4, %v324_v22, %v320_v21 }
  0xb8   : > { %v327_v24 = vmul.f32 %v325_v23, %v304_v6 }
 0x10e   : > { %v330_v25 = vpop.permute.xlu0 %329 }
 0x10f   : > { %v332_v26 = vmul.f32 %v330_v25, %v327_v24 }
 0x111   : > { %v333_v27 = vpack.c.bf16 %v332_v26, %v332_v26 }
 0x113   : > { %518 = vmatmul.msk.bf16.vlgmr.msra.gmra.mxu1 %vm366_vm5, %v333_v27 }
 0x116   : > { %v387_v28 = vpop.permute.xlu0 %386 }
 0x190   : > { %v379_v29 = vpop.f32.mrf.mxu1 }
 0x191   : > { %v389_v30 = vmul.f32 %v387_v28, %v379_v29 }
 0x193   : > { %390 = vst.msk [vmem:[%s272_s20] sm:$0xff] %vm291_vm0, %v389_v30 }
 0x198   : > { %v381_v31 = vpop.f32.mrf.mxu1 }
 0x199 PF: > { %s23_s22 = sadd.s32 1, %s565_s22  }
 0x19a   : > { %p20_p6 = scmp.ge.s32.totalorder %s23_s22, 10  }
 0x19c   :  { %22 = sbr.rel (!%p20_p6) target bundleno = 7 (0x7), region = 75 }

// kernel: qwen2_moe_layer.3
= control target key start
LH: loop header
LB: loop body
LE: loop exit
PB: predicated region body
PF: predicated region fallthrough
CT: control target
= control target key end

     0   :  { %10 = vsyncpa [#allocation3], 0  ;;  %s770_s0 = inlined_call_operand.vmem [shape: bf16[16,32], index: 0, kind: input, shape index: {}]   ;;  %s771_s1 = inlined_call_operand.vmem [shape: f32[16,32], index: 1, kind: input, shape index: {}]   ;;  %s772_s2 = inlined_call_operand.vmem [shape: bf16[32,128], index: 2, kind: input, shape index: {}]   ;;  %s773_s3 = inlined_call_operand.vmem [shape: bf16[64,32], index: 3, kind: input, shape index: {}]   ;;  %s774_s4 = inlined_call_operand.vmem [shape: f32[1,32], index: 4, kind: input, shape index: {}]   ;;  %s775_s5 = inlined_call_operand.hbm [shape: bf16[16,32], index: 5, kind: output, shape index: {}]  }
   0x1   :  { %12 = vsyncpa [#allocation3 + $0x1], 0  ;;  %s657_s18 = smov 0   ;;  %s659_s19 = smov 0  }
   0x2   :  { %s661_s20 = smov 0   ;;  %s663_s21 = smov 0  }
   0x3 LB: > { %s678_s22 = sadd.s32 4294967295, %s624_s21   ;;  %s468_s23 = sadd.s32 4294967294, %s624_s21   ;;  %s624_s21 = sphi %s663_s21, %s781_s21   ;;  %s620_s20 = sphi %s661_s20, %s780_s20   ;;  %s616_s19 = sphi %s659_s19, %s779_s19   ;;  %s612_s18 = sphi %s657_s18, %s778_s18  }
   0x4   : > { %s682_s24 = sadd.s32 1, %s624_s21   ;;  %s140_s25 = sadd.s32 1, %s620_s20 }
   0x5   : > { %s137_s26 = ssub.s32 %s624_s21, %s682_s24  ;;  %p150_p0 = scmp.ne.s32.totalorder %s620_s20, %s616_s19 }
   0x6   : > { %p138_p1 = scmp.eq.s32.totalorder %s137_s26, 0  ;;  %p151_p2 = scmp.eq.s32.totalorder %s678_s22, 1 }
   0x7   : > { %p156_p3 = scmp.ne.s32.totalorder %s616_s19, %s612_s18  ;;  %p157_p4 = scmp.eq.s32.totalorder %s468_s23, 1 }
   0x8   : > { %s693_s27 = scalar_select %p138_p1, %s620_s20, %s140_s25  }
   0x9   : > { %p695_p5 = por %p151_p2, %p150_p0  ;;  %p699_p6 = por %p157_p4, %p156_p3 }
   0xa   : > { %p471_p7 = scmp.ge.s32.totalorder %s624_s21, 1  ;;  %p198_p8 = scmp.lt.s32.totalorder %s624_s21, 3 }
   0xc   : > { %p199_p9 = pnand %p471_p7, %p198_p8 }
   0xd   : > { %p229_p10 = scmp.lt.s32.totalorder (!%p199_p9), %s678_s22, 1  ;;  %s626_s14 = smov (!%p199_p9), 64  }
   0xe   : > { %202 = sbr.rel (%p199_p9) target bundleno = 408 (0x198), region = 40 }
  0x13   : > { %v508_v0 = vld [vmem:[%s772_s2 + $0x8] sm:$0xff]  ;;  %v507_v1 = vld [vmem:[%s772_s2] sm:$0xff]  ;;  %s713_s9 = scalar_select %p229_p10, %s678_s22, 1  ;;  %vm255_vm0 = vcmask 261120   ;;  %v512_v5 = vld [vmem:[%s773_s3 + $0x18] sm:$0xff]  ;;  %vm330_vm5 = vcmask 523264  }
  0x14   : > { %265 = vmatpush.bf16.msra.mxu0 %v508_v0  ;;  %338 = vmatpush.bf16.msra.mxu1 %v512_v5  ;;  %v511_v6 = vld [vmem:[%s773_s3 + $0x10] sm:$0xff]  ;;  %v510_v7 = vld [vmem:[%s773_s3 + $0x8] sm:$0xff]  ;;  %v553_v9 = vld [vmem:[%s774_s4] ss:$0 sm:$0xff]  ;;  %vm379_vm10 = vcmask 257024  }
  0x15   : > { %s473_s10 = sshll.u32 %s713_s9, 2  ;;  %v509_v15 = vld [vmem:[%s773_s3] sm:$0xff]  ;;  %s474_s11 = sshll.u32 %s713_s9, 3 }
  0x16   : > { %s232_s13 = scalar_lea.vmem %s770_s0, %s473_s10  ;;  %s226_s10 = sand.u32 1, %s616_s19  }
  0x17   : > { %v238_v2 = vld [vmem:[%s232_s13] sm:$0xf]  ;;  %s472_s12 = sshll.u32 %s226_s10, 2  ;;  %s504_s13 = sshll.u32 %s678_s22, 2 }
  0x18   : > { %266 = vmatpush.bf16.msra.mxu0 %v507_v1  ;;  %339 = vmatpush.bf16.msra.mxu1 %v511_v6  ;;  %v347_v8 = vunpack.c.l.bf16 %v238_v2  ;;  %s236_s16 = scalar_lea.vmem %s771_s1, %s474_s11  ;;  %s392_s25 = scalar_lea.hbm %s775_s5, %s504_s13 }
  0x19   : > { %v375_v45 = vld [vmem:[%s236_s16] sm:$0xff]  ;;  %s228_s9 = scalar_lea.vmem [#allocation2], %s472_s12  ;;  %s396_s30 = sshll.u32 %s392_s25, 4  ;;  %s397_s30 = int_to_ptr.hbm [resolvable:$true] %s396_s30 }
  0x1a   : > { %v352_v10 = vmul.f32 %v553_v9, %v347_v8  ;;  %s394_s26 = sshll.u32 %s228_s9, 4  ;;  %s382_s22 = scalar_lea.sflag [#allocation3], %s226_s10  ;;  %s395_s26 = int_to_ptr.vmem [resolvable:$true] %s394_s26 }
  0x1b   : > { %483 = vmatmul.msk.bf16.vlgmr.msra.gmra.mxu0 %vm255_vm0, %v238_v2  ;;  %s576_s6 = sshra.s32 %s397_s30, 4  ;;  %s582_s12 = scalar_lea.hbm %s775_s5, 8  ;;  %s577_s6 = int_to_ptr.hbm [resolvable:$true] %s576_s6 }
  0x1c   : > { %340 = vmatpush.bf16.msra.mxu1 %v510_v7  ;;  %v353_v11 = vsel %vm255_vm0, %v352_v10, 0.0  ;;  %s578_s7 = scalar_lea.hbm %s577_s6, 4  ;;  %p583_p0 = scmp.lt.s32.totalorder %s577_s6, %s775_s5 }
  0x1d   : > { %p579_p11 = scmp.ne.s32.totalorder %s577_s6, %s578_s7  ;;  %p584_p1 = scmp.lt.s32.totalorder %s582_s12, %s578_s7 }
  0x1f   : > { %p580_p12 = pnand %p579_p11, %p695_p5  ;;  %p585_p2 = por %p584_p1, %p583_p0 }
  0x20   : > { %341 = vmatpush.bf16.msra.mxu1 %v509_v15 }
  0x21   : > { %p581_p13 = pneg %p580_p12 }
  0x23   : > { %p586_p3 = pnand %p585_p2, %p581_p13 }
  0x98   : > { %v268_v3 = vpop.f32.mrf.mxu0 }
  0x99   : > { %293 = vrot.lane.b32.xlu0 %v268_v3, %s626_s14  ;;  %v484_v12 = vmul.f32 -1.442695, %v268_v3 }
  0x9b   : > { %554 = vpow2.f32 %v484_v12 }
  0xa0   : > { %v270_v4 = vpop.f32.mrf.mxu0 }
  0xa1   : > { %v555_v13 = vpop.eup %554 }
  0xa2   : > { %v275_v14 = vadd.f32 1.0, %v555_v13 }
  0xa4   : > { %556 = vrcp.f32 %v275_v14  ;;  %v287_v21 = vand.u32 2147483648, %v275_v14  ;;  %vm281_vm2 = vweird.f32 %v275_v14  ;;  %v285_v22 = vand.u32 2147483647, %v275_v14 }
  0xa6   : > { %v288_v24 = vor.u32 1.1754944e-38, %v287_v21  ;;  %vm286_vm4 = vcmp.eq.f32.partialorder %v285_v22, 8.507059e+37 }
  0xaa   : > { %v557_v16 = vpop.eup %556 }
  0xab   : > { %v277_v17 = vmul.f32 %v557_v16, %v275_v14  ;;  %vm282_vm1 = vweird.f32 %v557_v16 }
  0xac   : > { %vm283_vm3 = vmor %vm281_vm2, %vm282_vm1 }
  0xad   : > { %v278_v18 = vsub.f32 1.0, %v277_v17 }
  0xaf   : > { %v279_v19 = vmul.f32 %v557_v16, %v278_v18 }
  0xb1   : > { %v280_v20 = vadd.f32 %v557_v16, %v279_v19 }
  0xb3   : > { %v284_v23 = vsel %vm283_vm3, %v557_v16, %v280_v20 }
  0xb4   : > { %v289_v25 = vsel %vm286_vm4, %v288_v24, %v284_v23 }
  0xb5   : > { %v291_v26 = vmul.f32 %v289_v25, %v268_v3 }
  0xc3   : > { %354 = vadd.xlane.f32.xlu0 %v353_v11 }
 0x10b   : > { %v294_v27 = vpop.permute.xlu0 %293 }
 0x10c   : > { %v296_v28 = vmul.f32 %v294_v27, %v291_v26 }
 0x10e   : > { %v297_v29 = vpack.c.bf16 %v296_v28, %v296_v28 }
 0x110   : > { %501 = vmatmul.msk.bf16.vlgmr.msra.gmra.mxu1 %vm330_vm5, %v297_v29 }
 0x136   : > { %v355_v30 = vpop.xlane.xlu0 %354 }
 0x137   : > { %v502_v31 = vmul.f32 -1.442695, %v355_v30 }
 0x139   : > { %558 = vpow2.f32 %v502_v31 }
 0x13f   : > { %v559_v32 = vpop.eup %558 }
 0x140   : > { %v359_v33 = vadd.f32 1.0, %v559_v32 }
 0x142   : > { %560 = vrcp.f32 %v359_v33  ;;  %vm365_vm6 = vweird.f32 %v359_v33  ;;  %v371_v38 = vand.u32 2147483648, %v359_v33  ;;  %v369_v40 = vand.u32 2147483647, %v359_v33 }
 0x144   : > { %v372_v41 = vor.u32 1.1754944e-38, %v371_v38  ;;  %vm370_vm9 = vcmp.eq.f32.partialorder %v369_v40, 8.507059e+37 }
 0x148   : > { %v561_v34 = vpop.eup %560 }
 0x149   : > { %v361_v35 = vmul.f32 %v561_v34, %v359_v33  ;;  %vm366_vm7 = vweird.f32 %v561_v34 }
 0x14a   : > { %vm367_vm8 = vmor %vm365_vm6, %vm366_vm7 }
 0x14b   : > { %v362_v36 = vsub.f32 1.0, %v361_v35 }
 0x14d   : > { %v363_v37 = vmul.f32 %v561_v34, %v362_v36 }
 0x14f   : > { %v364_v39 = vadd.f32 %v561_v34, %v363_v37 }
 0x151   : > { %v368_v42 = vsel %vm367_vm8, %v561_v34, %v364_v39 }
 0x152   : > { %v373_v44 = vsel %vm370_vm9, %v372_v41, %v368_v42 }
 0x18d   : > { %v343_v43 = vpop.f32.mrf.mxu1 }
 0x18e   : > { %v376_v46 = vmul.f32 %v373_v44, %v343_v43 }
 0x190   : > { %v377_v47 = vadd.f32 %v376_v46, %v375_v45 }
 0x192   : > { %v378_v48 = vpack.c.bf16 %v377_v47, %v377_v47 }
 0x194   : > { %380 = vst.msk [vmem:[%s228_s9] sm:$0xf] %vm379_vm10, %v378_v48 }
 0x195   : > { %v345_v49 = vpop.f32.mrf.mxu1 }
 0x196   : > { %589 = shalt.err (!%p586_p3)
}
 0x197   : > { %513 = dma.vmem_to_hbm [thread:$0]  (%p695_p5), %s395_s26, 64, %s397_s30, %s382_s22  }
 0x198 PF: > { %p519_p4 = scmp.ge.s32.totalorder %s624_s21, 2  ;;  %s408_s10 = sand.u32 1, %s612_s18  }
 0x199   : > { %s409_s15 = scalar_lea.sflag [#allocation3], %s408_s10 }
 0x19a   : > { %p516_p7 = pnand %p519_p4, %p699_p6 }
 0x19c   : > { %p517_p8 = pneg %p516_p7 }
 0x19e   : > { %607 = dma.done.wait (%p517_p8), %s409_s15, 64  }
 0x19f   : > { %609 = vsyncadd (%p517_p8), %s409_s15, 4294967232  ;;  %p15_p9 = scmp.ge.s32.totalorder %s682_s24, 4   ;;  %s778_s18 = smov %s616_s19 }
 0x1a0   : > { %s779_s19 = smov %s620_s20  ;;  %s780_s20 = smov %s693_s27 }
 0x1a1   : > { %s781_s21 = smov %s682_s24  ;;  %17 = sbr.rel (!%p15_p9) target bundleno = 3 (0x3), region = 78 }
 0x1a6   :  { %415 = vsyncpa [#allocation3], 1 }
 0x1a7   :  { %417 = vsyncpa [#allocation3 + $0x1], 1 }

</bundles_post_ra>
